<compile_context>
chip_gen: v5e
topology: v5e:2x2
jax: 0.10.0
libtpu: 0.0.40
codegen_flags: <defaults>
</compile_context>

<pallas_src>
import functools

import jax
import jax.numpy as jnp
import numpy as np
from jax import lax
from jax.experimental import pallas as pl
from jax.experimental.pallas import tpu as pltpu


def _dwconv_gn_pw_kernel(x_ref, wp_ref, w2b_ref, o_ref, *,
                         H, W, C, CO, Nb, num_groups, gsize, inv_n, eps):
    HW = H * W
    wp = wp_ref[...]                       # (C, 12): [9 depthwise taps | b1 | gamma | beta]
    w2 = w2b_ref[:, 0:C]                   # (CO, C)  1x1 weights (transposed)
    b2 = w2b_ref[:, C:C + 1]               # (CO, 1)

    # ---- boundary masks from an in-kernel lane iota (no rc operand / DMA) ----
    # Row masks need no division (row >= 1 <=> idx >= W, etc.); the column index uses an
    # exact f32 floor-div (small integers are exact in f32), avoiding vector int div/rem.
    idx = lax.broadcasted_iota(jnp.int32, (1, HW), 1)
    idx_f = idx.astype(jnp.float32)
    col_f = idx_f - jnp.floor(idx_f / W) * W
    row_mask = {-1: idx >= W, 0: None, 1: idx < (H - 1) * W}
    col_mask = {-1: col_f >= 1.0, 0: None, 1: col_f <= float(W - 2)}

    def _and(m1, m2):
        if m1 is None:
            return m2
        if m2 is None:
            return m1
        return jnp.logical_and(m1, m2)

    # Pre-AND the 8 per-tap masks once; each tap then costs a single select.
    tap_mask = {(a, b): _and(row_mask[a], col_mask[b])
                for a in (-1, 0, 1) for b in (-1, 0, 1)}

    # 0/1 group-membership matrix for the cross-channel GroupNorm reduction
    # (tiny matmul on the otherwise-idle MXU; avoids sublane reshapes). Only for gsize>1.
    if gsize > 1:
        gi = lax.broadcasted_iota(jnp.int32, (C, C), 0) // gsize
        gj = lax.broadcasted_iota(jnp.int32, (C, C), 1) // gsize
        gmat = (gi == gj).astype(jnp.float32)

    def one_image(x):                      # x: (C, HW) f32
        # ---- depthwise 3x3 conv, stride=1, padding=1, groups=C ----
        acc = x * wp[:, 4:5]               # center tap (a=0, b=0): no roll, no mask
        for a in (-1, 0, 1):
            for b in (-1, 0, 1):
                if a == 0 and b == 0:
                    continue
                k = (a + 1) * 3 + (b + 1)                              # = dy*3 + dx
                shifted = pltpu.roll(x, (-(a * W + b)) % HW, axis=1)   # XLU slot
                shifted = jnp.where(tap_mask[(a, b)], shifted, 0.0)    # one select
                acc = acc + shifted * wp[:, k:k + 1]
        acc = acc + wp[:, 9:10]            # depthwise bias b1

        # ---- GroupNorm(num_groups): one-pass stats + fused scale/shift ----
        s_c = jnp.sum(acc, axis=1, keepdims=True)          # (C, 1) lane reduce
        q_c = jnp.sum(acc * acc, axis=1, keepdims=True)    # (C, 1)
        if gsize > 1:
            s_c = jnp.dot(gmat, s_c, preferred_element_type=jnp.float32)
            q_c = jnp.dot(gmat, q_c, preferred_element_type=jnp.float32)
        mean = s_c * inv_n
        var = jnp.maximum(q_c * inv_n - mean * mean, 0.0)
        scale = wp[:, 10:11] * lax.rsqrt(var + eps)        # gamma * inv_std     (C, 1)
        shift = wp[:, 11:12] - mean * scale                # beta - mean * scale (C, 1)
        xn = acc * scale + shift                           # 2 VPU ops / element

        # ---- 1x1 pointwise conv: (CO, C) @ (C, HW) on the MXU, lane-dense store ----
        return jnp.dot(w2, xn, preferred_element_type=jnp.float32) + b2

    for i in range(Nb):                    # static unroll; Nb is small
        o_ref[i] = one_image(x_ref[i].astype(jnp.float32))


def _choose_images_per_step(N, C, CO, HW, block_budget_bytes=4 << 20):
    """Largest divisor of N that (a) keeps >=2 grid steps when N >= 2 (so both v7x
    TensorCores get work) and (b) keeps the double-buffered in/out blocks small in VMEM."""
    per_image_bytes = 2 * (C + CO) * HW * 4            # double-buffered in + out, f32
    cap = max(1, block_budget_bytes // per_image_bytes)
    best = 1
    for d in range(1, N + 1):
        if N % d == 0 and d <= cap and (N // d) >= min(2, N):
            best = d
    return best


def depthwise_conv2d_block(x_nchw, params, *, num_groups=4, eps=1e-5,
                           images_per_step=None):
    """Pallas implementation of DepthWiseConv2d.forward. Input/output are NCHW."""
    w1, b1, gamma, beta, w2, b2 = params   # (3,3,C), (C,), (C,), (C,), (C,CO), (CO,)
    N, C, H, W = x_nchw.shape
    CO = w2.shape[1]
    gsize = C // num_groups
    HW = H * W

    Nb = images_per_step if images_per_step is not None else \
        _choose_images_per_step(N, C, CO, HW)
    assert N % Nb == 0

    # Free reshape (NCHW is contiguous): one image = (C, H*W). Native dtype, cast in-kernel.
    x_flat = x_nchw.reshape(N, C, HW)

    # Pack the tiny per-channel params into two small operands (fewer DMA descriptors):
    #   wp  = (C, 12)  : cols 0..8 = depthwise taps (k = dy*3+dx), 9 = b1, 10 = gamma, 11 = beta
    #   w2b = (CO, C+1): cols 0..C-1 = 1x1 weights (transposed), col C = b2
    wp = jnp.concatenate(
        [jnp.transpose(w1.reshape(9, C)), b1.reshape(C, 1),
         gamma.reshape(C, 1), beta.reshape(C, 1)], axis=1).astype(jnp.float32)
    w2b = jnp.concatenate([jnp.transpose(w2), b2.reshape(CO, 1)],
                          axis=1).astype(jnp.float32)

    kernel = functools.partial(
        _dwconv_gn_pw_kernel, H=H, W=W, C=C, CO=CO, Nb=Nb, num_groups=num_groups,
        gsize=gsize, inv_n=1.0 / (HW * gsize), eps=eps)

    out_flat = pl.pallas_call(
        kernel,
        out_shape=jax.ShapeDtypeStruct((N, CO, HW), jnp.float32),
        grid_spec=pltpu.PrefetchScalarGridSpec(
            num_scalar_prefetch=0,
            grid=(N // Nb,),                               # Nb independent images / step
            in_specs=[
                pl.BlockSpec((Nb, C, HW), lambda n: (n, 0, 0)),
                pl.BlockSpec((C, 12), lambda n: (0, 0)),
                pl.BlockSpec((CO, C + 1), lambda n: (0, 0)),
            ],
            out_specs=pl.BlockSpec((Nb, CO, HW), lambda n: (n, 0, 0)),
        ),
        # Grid steps are independent -> shard across TensorCores on v7x;
        # measured-neutral on single-core v5e/v6e.
        compiler_params=pltpu.CompilerParams(dimension_semantics=("parallel",)),
    )(x_flat, wp, w2b)

    return out_flat.reshape(N, CO, H, W)                   # already NCHW order


def reference(x_nchw, params, *, num_groups=4, eps=1e-5):
    """Pure-JAX reference matching the PyTorch module semantics."""
    w1, b1, gamma, beta, w2, b2 = params
    N, C, H, W = x_nchw.shape
    x = jnp.transpose(x_nchw, (0, 2, 3, 1)).astype(jnp.float32)
    w1_hwio = w1.reshape(3, 3, 1, C)
    y = lax.conv_general_dilated(x, w1_hwio, window_strides=(1, 1),
                                 padding=((1, 1), (1, 1)),
                                 dimension_numbers=('NHWC', 'HWIO', 'NHWC'),
                                 feature_group_count=C)
    y = y + b1
    g = C // num_groups
    yg = y.reshape(N, H, W, num_groups, g)
    mean = jnp.mean(yg, axis=(1, 2, 4), keepdims=True)
    var = jnp.mean((yg - mean) ** 2, axis=(1, 2, 4), keepdims=True)
    yn = ((yg - mean) / jnp.sqrt(var + eps)).reshape(N, H, W, C)
    yn = yn * gamma + beta
    out = jnp.einsum('nhwc,co->nhwo', yn, w2) + b2
    return jnp.transpose(out, (0, 3, 1, 2))


if __name__ == "__main__":
    def run_case(key, N, C_IN, C_OUT, H, W):
        k_x, k_w1, k_b1, k_g, k_b, k_w2, k_b2 = jax.random.split(key, 7)
        x = jax.random.normal(k_x, (N, C_IN, H, W), dtype=jnp.float32)
        # Deterministic parameter init (shapes from the module's __init__).
        w1 = jax.random.normal(k_w1, (3, 3, C_IN), dtype=jnp.float32) * 0.2     # depthwise 3x3
        b1 = jax.random.normal(k_b1, (C_IN,), dtype=jnp.float32) * 0.1
        gamma = 1.0 + 0.1 * jax.random.normal(k_g, (C_IN,), dtype=jnp.float32)  # GroupNorm affine
        beta = 0.1 * jax.random.normal(k_b, (C_IN,), dtype=jnp.float32)
        w2 = jax.random.normal(k_w2, (C_IN, C_OUT), dtype=jnp.float32) * 0.2    # 1x1 conv
        b2 = jax.random.normal(k_b2, (C_OUT,), dtype=jnp.float32) * 0.1
        params = (w1, b1, gamma, beta, w2, b2)

        out = jax.block_until_ready(depthwise_conv2d_block(x, params))
        ref = jax.block_until_ready(reference(x, params))
        np.testing.assert_allclose(np.asarray(out), np.asarray(ref),
                                   rtol=2e-4, atol=2e-4)

    key = jax.random.PRNGKey(0)
    k1, k2, k3 = jax.random.split(key, 3)

    # Primary small shape consistent with the module: dim_in=4 (GroupNorm(4)), dim_out=8.
    run_case(k1, N=2, C_IN=4, C_OUT=8, H=16, W=16)
    # Exercise the multi-image-per-grid-step path (Nb=4, 2 grid steps).
    run_case(k2, N=8, C_IN=4, C_OUT=8, H=16, W=16)
    # Exercise the gsize>1 group reduction (C=8, 4 groups of 2 channels).
    run_case(k3, N=2, C_IN=8, C_OUT=8, H=16, W=16)

    print("KERNEL_OK")
</pallas_src>

<mosaic_0001>
module attributes {stable_mosaic.version = 11 : i64} {
  func.func @_dwconv_gn_pw_kernel(%arg0: i32, %arg1: memref<1x4x256xf32, #tpu.memory_space<vmem>>, %arg2: memref<4x12xf32, #tpu.memory_space<vmem>>, %arg3: memref<8x5xf32, #tpu.memory_space<vmem>>, %arg4: memref<1x8x256xf32, #tpu.memory_space<vmem>>) attributes {dimension_semantics = [#tpu.dimension_semantics<parallel>], iteration_bounds = array<i64: 2>, scalar_prefetch = 0 : i64, scratch_operands = 0 : i64, tpu.core_type = #tpu.core_type<tc>, window_params = [{transform_indices = @transform_0, window_bounds = array<i64: 1, 4, 256>}, {pipeline_mode = #tpu.pipeline_mode<synchronous>, transform_indices = @transform_1, window_bounds = array<i64: 4, 12>}, {pipeline_mode = #tpu.pipeline_mode<synchronous>, transform_indices = @transform_2, window_bounds = array<i64: 8, 5>}, {transform_indices = @transform_3, window_bounds = array<i64: 1, 8, 256>}]} {
    %c0 = arith.constant 0 : index
    %c0_0 = arith.constant 0 : index
    %0 = vector.load %arg2[%c0, %c0_0] : memref<4x12xf32, #tpu.memory_space<vmem>>, vector<4x12xf32>
    %c0_1 = arith.constant 0 : index
    %c0_2 = arith.constant 0 : index
    %1 = vector.load %arg3[%c0_1, %c0_2] : memref<8x5xf32, #tpu.memory_space<vmem>>, vector<8x4xf32>
    %c0_3 = arith.constant 0 : index
    %c4 = arith.constant 4 : index
    %2 = vector.load %arg3[%c0_3, %c4] : memref<8x5xf32, #tpu.memory_space<vmem>>, vector<8x1xf32>
    %3 = tpu.iota {dimensions = array<i32: 1>} : vector<1x256xi32>
    %4 = arith.sitofp %3 : vector<1x256xi32> to vector<1x256xf32>
    %cst = arith.constant 1.600000e+01 : f32
    %5 = vector.broadcast %cst : f32 to vector<1x256xf32>
    %6 = arith.divf %4, %5 : vector<1x256xf32>
    %7 = math.floor %6 : vector<1x256xf32>
    %cst_4 = arith.constant 1.600000e+01 : f32
    %8 = vector.broadcast %cst_4 : f32 to vector<1x256xf32>
    %9 = arith.mulf %7, %8 : vector<1x256xf32>
    %10 = arith.subf %4, %9 : vector<1x256xf32>
    %c16_i32 = arith.constant 16 : i32
    %11 = vector.broadcast %c16_i32 : i32 to vector<1x256xi32>
    %12 = arith.cmpi sge, %3, %11 : vector<1x256xi32>
    %c240_i32 = arith.constant 240 : i32
    %13 = vector.broadcast %c240_i32 : i32 to vector<1x256xi32>
    %14 = arith.cmpi slt, %3, %13 : vector<1x256xi32>
    %cst_5 = arith.constant 1.000000e+00 : f32
    %15 = vector.broadcast %cst_5 : f32 to vector<1x256xf32>
    %16 = arith.cmpf oge, %10, %15 : vector<1x256xf32>
    %cst_6 = arith.constant 1.400000e+01 : f32
    %17 = vector.broadcast %cst_6 : f32 to vector<1x256xf32>
    %18 = arith.cmpf ole, %10, %17 : vector<1x256xf32>
    %19 = arith.andi %12, %16 : vector<1x256xi1>
    %20 = arith.andi %12, %18 : vector<1x256xi1>
    %21 = arith.andi %14, %16 : vector<1x256xi1>
    %22 = arith.andi %14, %18 : vector<1x256xi1>
    %c0_7 = arith.constant 0 : index
    %c0_8 = arith.constant 0 : index
    %c0_9 = arith.constant 0 : index
    %23 = vector.load %arg1[%c0_7, %c0_8, %c0_9] : memref<1x4x256xf32, #tpu.memory_space<vmem>>, vector<1x4x256xf32>
    %24 = vector.shape_cast %23 : vector<1x4x256xf32> to vector<4x256xf32>
    %25 = vector.extract_strided_slice %0 {offsets = [0, 4], sizes = [4, 1], strides = [1, 1]} : vector<4x12xf32> to vector<4x1xf32>
    %26 = vector.broadcast %25 : vector<4x1xf32> to vector<4x256xf32>
    %27 = arith.mulf %24, %26 : vector<4x256xf32>
    %c17_i32 = arith.constant 17 : i32
    %28 = tpu.dynamic_rotate %24 by %c17_i32 dim 1 : vector<4x256xf32>, i32 -> vector<4x256xf32>
    %cst_10 = arith.constant 0.000000e+00 : f32
    %29 = vector.shape_cast %19 : vector<1x256xi1> to vector<1x256xi1>
    %30 = vector.broadcast %29 : vector<1x256xi1> to vector<4x256xi1>
    %31 = vector.broadcast %cst_10 : f32 to vector<4x256xf32>
    %32 = arith.select %30, %28, %31 : vector<4x256xi1>, vector<4x256xf32>
    %33 = vector.extract_strided_slice %0 {offsets = [0, 0], sizes = [4, 1], strides = [1, 1]} : vector<4x12xf32> to vector<4x1xf32>
    %34 = vector.broadcast %33 : vector<4x1xf32> to vector<4x256xf32>
    %35 = arith.mulf %32, %34 : vector<4x256xf32>
    %36 = arith.addf %27, %35 : vector<4x256xf32>
    %c16_i32_11 = arith.constant 16 : i32
    %37 = tpu.dynamic_rotate %24 by %c16_i32_11 dim 1 : vector<4x256xf32>, i32 -> vector<4x256xf32>
    %cst_12 = arith.constant 0.000000e+00 : f32
    %38 = vector.shape_cast %12 : vector<1x256xi1> to vector<1x256xi1>
    %39 = vector.broadcast %38 : vector<1x256xi1> to vector<4x256xi1>
    %40 = vector.broadcast %cst_12 : f32 to vector<4x256xf32>
    %41 = arith.select %39, %37, %40 : vector<4x256xi1>, vector<4x256xf32>
    %42 = vector.extract_strided_slice %0 {offsets = [0, 1], sizes = [4, 1], strides = [1, 1]} : vector<4x12xf32> to vector<4x1xf32>
    %43 = vector.broadcast %42 : vector<4x1xf32> to vector<4x256xf32>
    %44 = arith.mulf %41, %43 : vector<4x256xf32>
    %45 = arith.addf %36, %44 : vector<4x256xf32>
    %c15_i32 = arith.constant 15 : i32
    %46 = tpu.dynamic_rotate %24 by %c15_i32 dim 1 : vector<4x256xf32>, i32 -> vector<4x256xf32>
    %cst_13 = arith.constant 0.000000e+00 : f32
    %47 = vector.shape_cast %20 : vector<1x256xi1> to vector<1x256xi1>
    %48 = vector.broadcast %47 : vector<1x256xi1> to vector<4x256xi1>
    %49 = vector.broadcast %cst_13 : f32 to vector<4x256xf32>
    %50 = arith.select %48, %46, %49 : vector<4x256xi1>, vector<4x256xf32>
    %51 = vector.extract_strided_slice %0 {offsets = [0, 2], sizes = [4, 1], strides = [1, 1]} : vector<4x12xf32> to vector<4x1xf32>
    %52 = vector.broadcast %51 : vector<4x1xf32> to vector<4x256xf32>
    %53 = arith.mulf %50, %52 : vector<4x256xf32>
    %54 = arith.addf %45, %53 : vector<4x256xf32>
    %c1_i32 = arith.constant 1 : i32
    %55 = tpu.dynamic_rotate %24 by %c1_i32 dim 1 : vector<4x256xf32>, i32 -> vector<4x256xf32>
    %cst_14 = arith.constant 0.000000e+00 : f32
    %56 = vector.shape_cast %16 : vector<1x256xi1> to vector<1x256xi1>
    %57 = vector.broadcast %56 : vector<1x256xi1> to vector<4x256xi1>
    %58 = vector.broadcast %cst_14 : f32 to vector<4x256xf32>
    %59 = arith.select %57, %55, %58 : vector<4x256xi1>, vector<4x256xf32>
    %60 = vector.extract_strided_slice %0 {offsets = [0, 3], sizes = [4, 1], strides = [1, 1]} : vector<4x12xf32> to vector<4x1xf32>
    %61 = vector.broadcast %60 : vector<4x1xf32> to vector<4x256xf32>
    %62 = arith.mulf %59, %61 : vector<4x256xf32>
    %63 = arith.addf %54, %62 : vector<4x256xf32>
    %c255_i32 = arith.constant 255 : i32
    %64 = tpu.dynamic_rotate %24 by %c255_i32 dim 1 : vector<4x256xf32>, i32 -> vector<4x256xf32>
    %cst_15 = arith.constant 0.000000e+00 : f32
    %65 = vector.shape_cast %18 : vector<1x256xi1> to vector<1x256xi1>
    %66 = vector.broadcast %65 : vector<1x256xi1> to vector<4x256xi1>
    %67 = vector.broadcast %cst_15 : f32 to vector<4x256xf32>
    %68 = arith.select %66, %64, %67 : vector<4x256xi1>, vector<4x256xf32>
    %69 = vector.extract_strided_slice %0 {offsets = [0, 5], sizes = [4, 1], strides = [1, 1]} : vector<4x12xf32> to vector<4x1xf32>
    %70 = vector.broadcast %69 : vector<4x1xf32> to vector<4x256xf32>
    %71 = arith.mulf %68, %70 : vector<4x256xf32>
    %72 = arith.addf %63, %71 : vector<4x256xf32>
    %c241_i32 = arith.constant 241 : i32
    %73 = tpu.dynamic_rotate %24 by %c241_i32 dim 1 : vector<4x256xf32>, i32 -> vector<4x256xf32>
    %cst_16 = arith.constant 0.000000e+00 : f32
    %74 = vector.shape_cast %21 : vector<1x256xi1> to vector<1x256xi1>
    %75 = vector.broadcast %74 : vector<1x256xi1> to vector<4x256xi1>
    %76 = vector.broadcast %cst_16 : f32 to vector<4x256xf32>
    %77 = arith.select %75, %73, %76 : vector<4x256xi1>, vector<4x256xf32>
    %78 = vector.extract_strided_slice %0 {offsets = [0, 6], sizes = [4, 1], strides = [1, 1]} : vector<4x12xf32> to vector<4x1xf32>
    %79 = vector.broadcast %78 : vector<4x1xf32> to vector<4x256xf32>
    %80 = arith.mulf %77, %79 : vector<4x256xf32>
    %81 = arith.addf %72, %80 : vector<4x256xf32>
    %c240_i32_17 = arith.constant 240 : i32
    %82 = tpu.dynamic_rotate %24 by %c240_i32_17 dim 1 : vector<4x256xf32>, i32 -> vector<4x256xf32>
    %cst_18 = arith.constant 0.000000e+00 : f32
    %83 = vector.shape_cast %14 : vector<1x256xi1> to vector<1x256xi1>
    %84 = vector.broadcast %83 : vector<1x256xi1> to vector<4x256xi1>
    %85 = vector.broadcast %cst_18 : f32 to vector<4x256xf32>
    %86 = arith.select %84, %82, %85 : vector<4x256xi1>, vector<4x256xf32>
    %87 = vector.extract_strided_slice %0 {offsets = [0, 7], sizes = [4, 1], strides = [1, 1]} : vector<4x12xf32> to vector<4x1xf32>
    %88 = vector.broadcast %87 : vector<4x1xf32> to vector<4x256xf32>
    %89 = arith.mulf %86, %88 : vector<4x256xf32>
    %90 = arith.addf %81, %89 : vector<4x256xf32>
    %c239_i32 = arith.constant 239 : i32
    %91 = tpu.dynamic_rotate %24 by %c239_i32 dim 1 : vector<4x256xf32>, i32 -> vector<4x256xf32>
    %cst_19 = arith.constant 0.000000e+00 : f32
    %92 = vector.shape_cast %22 : vector<1x256xi1> to vector<1x256xi1>
    %93 = vector.broadcast %92 : vector<1x256xi1> to vector<4x256xi1>
    %94 = vector.broadcast %cst_19 : f32 to vector<4x256xf32>
    %95 = arith.select %93, %91, %94 : vector<4x256xi1>, vector<4x256xf32>
    %96 = vector.extract_strided_slice %0 {offsets = [0, 8], sizes = [4, 1], strides = [1, 1]} : vector<4x12xf32> to vector<4x1xf32>
    %97 = vector.broadcast %96 : vector<4x1xf32> to vector<4x256xf32>
    %98 = arith.mulf %95, %97 : vector<4x256xf32>
    %99 = arith.addf %90, %98 : vector<4x256xf32>
    %100 = vector.extract_strided_slice %0 {offsets = [0, 9], sizes = [4, 1], strides = [1, 1]} : vector<4x12xf32> to vector<4x1xf32>
    %101 = vector.broadcast %100 : vector<4x1xf32> to vector<4x256xf32>
    %102 = arith.addf %99, %101 : vector<4x256xf32>
    %cst_20 = arith.constant dense<0.000000e+00> : vector<4xf32>
    %103 = vector.multi_reduction <add>, %102, %cst_20 [1] : vector<4x256xf32> to vector<4xf32>
    %104 = vector.shape_cast %103 : vector<4xf32> to vector<4x1xf32>
    %105 = arith.mulf %102, %102 : vector<4x256xf32>
    %cst_21 = arith.constant dense<0.000000e+00> : vector<4xf32>
    %106 = vector.multi_reduction <add>, %105, %cst_21 [1] : vector<4x256xf32> to vector<4xf32>
    %107 = vector.shape_cast %106 : vector<4xf32> to vector<4x1xf32>
    %cst_22 = arith.constant 3.906250e-03 : f32
    %108 = vector.broadcast %cst_22 : f32 to vector<4x1xf32>
    %109 = arith.mulf %104, %108 : vector<4x1xf32>
    %cst_23 = arith.constant 3.906250e-03 : f32
    %110 = vector.broadcast %cst_23 : f32 to vector<4x1xf32>
    %111 = arith.mulf %107, %110 : vector<4x1xf32>
    %112 = arith.mulf %109, %109 : vector<4x1xf32>
    %113 = arith.subf %111, %112 : vector<4x1xf32>
    %cst_24 = arith.constant 0.000000e+00 : f32
    %114 = vector.broadcast %cst_24 : f32 to vector<4x1xf32>
    %115 = arith.maximumf %113, %114 : vector<4x1xf32>
    %116 = vector.extract_strided_slice %0 {offsets = [0, 10], sizes = [4, 1], strides = [1, 1]} : vector<4x12xf32> to vector<4x1xf32>
    %cst_25 = arith.constant 9.99999974E-6 : f32
    %117 = vector.broadcast %cst_25 : f32 to vector<4x1xf32>
    %118 = arith.addf %115, %117 : vector<4x1xf32>
    %119 = math.rsqrt %118 : vector<4x1xf32>
    %120 = arith.mulf %116, %119 : vector<4x1xf32>
    %121 = vector.extract_strided_slice %0 {offsets = [0, 11], sizes = [4, 1], strides = [1, 1]} : vector<4x12xf32> to vector<4x1xf32>
    %122 = arith.mulf %109, %120 : vector<4x1xf32>
    %123 = arith.subf %121, %122 : vector<4x1xf32>
    %124 = vector.broadcast %120 : vector<4x1xf32> to vector<4x256xf32>
    %125 = arith.mulf %102, %124 : vector<4x256xf32>
    %126 = vector.broadcast %123 : vector<4x1xf32> to vector<4x256xf32>
    %127 = arith.addf %125, %126 : vector<4x256xf32>
    %cst_26 = arith.constant dense<0.000000e+00> : vector<8x256xf32>
    %128 = tpu.matmul %1, %127, %cst_26 {dimension_numbers = #tpu.dot_dimension_numbers<[1], [0], [0], [1], [0, 0, 1, 1], [], []>} : vector<8x4xf32>, vector<4x256xf32>, vector<8x256xf32> -> vector<8x256xf32>
    %129 = vector.broadcast %2 : vector<8x1xf32> to vector<8x256xf32>
    %130 = arith.addf %128, %129 : vector<8x256xf32>
    %c0_27 = arith.constant 0 : index
    %c0_28 = arith.constant 0 : index
    %c0_29 = arith.constant 0 : index
    %131 = vector.load %arg4[%c0_27, %c0_28, %c0_29] : memref<1x8x256xf32, #tpu.memory_space<vmem>>, vector<1x8x256xf32>
    %132 = vector.shape_cast %131 : vector<1x8x256xf32> to vector<8x256xf32>
    %133 = vector.shape_cast %130 : vector<8x256xf32> to vector<1x8x256xf32>
    tpu.vector_store %arg4[%c0_27, %c0_28, %c0_29], %133 {strides = array<i32>} : memref<1x8x256xf32, #tpu.memory_space<vmem>>, vector<1x8x256xf32>,
    return
  }
  func.func @transform_0(%arg0: i32) -> (i32, i32, i32) {
    %c0_i32 = arith.constant 0 : i32
    %c0_i32_0 = arith.constant 0 : i32
    %c0_i32_1 = arith.constant 0 : i32
    return %arg0, %c0_i32, %c0_i32_0 : i32, i32, i32
  }
  func.func @transform_1(%arg0: i32) -> (i32, i32) {
    %c0_i32 = arith.constant 0 : i32
    %c0_i32_0 = arith.constant 0 : i32
    %c0_i32_1 = arith.constant 0 : i32
    return %c0_i32, %c0_i32_0 : i32, i32
  }
  func.func @transform_2(%arg0: i32) -> (i32, i32) {
    %c0_i32 = arith.constant 0 : i32
    %c0_i32_0 = arith.constant 0 : i32
    %c0_i32_1 = arith.constant 0 : i32
    return %c0_i32, %c0_i32_0 : i32, i32
  }
  func.func @transform_3(%arg0: i32) -> (i32, i32, i32) {
    %c0_i32 = arith.constant 0 : i32
    %c0_i32_0 = arith.constant 0 : i32
    %c0_i32_1 = arith.constant 0 : i32
    return %arg0, %c0_i32, %c0_i32_0 : i32, i32, i32
  }
}

</mosaic_0001>

<bundles_post_ra>
// kernel: tpu_custom_call.1
= control target key start
LH: loop header
LB: loop body
LE: loop exit
PB: predicated region body
PF: predicated region fallthrough
CT: control target
= control target key end

     0   :  { %8 = vsyncpa [#allocation3], 0  ;;  %s1424_s0 = inlined_call_operand.hbm [shape: f32[2,4,256], index: 0, kind: input, shape index: {}]   ;;  %s1425_s1 = inlined_call_operand.hbm [shape: f32[4,12], index: 1, kind: input, shape index: {}]   ;;  %s1426_s2 = inlined_call_operand.hbm [shape: f32[8,5], index: 2, kind: input, shape index: {}]   ;;  %s1427_s3 = inlined_call_operand.hbm [shape: f32[2,8,256], index: 3, kind: output, shape index: {}]  }
   0x1   :  { %10 = vsyncpa [#allocation3 + $0x1], 0 }
   0x2   :  { %11 = vsyncpa [#allocation6], 0 }
   0x3   :  { %12 = vsyncpa [#allocation4], 0 }
   0x4   :  { %14 = vsyncpa [#allocation4 + $0x1], 0  ;;  %s1085_s12 = smov 0   ;;  %s1087_s13 = smov 0  }
   0x5   :  { %s1089_s14 = smov 0   ;;  %s1091_s15 = smov 0  }
   0x6 LB: > { %s1106_s16 = sadd.s32 4294967295, %s1039_s15   ;;  %s748_s17 = sadd.s32 4294967294, %s1039_s15   ;;  %s1039_s15 = sphi %s1091_s15, %s1443_s15   ;;  %s1035_s14 = sphi %s1089_s14, %s1442_s14   ;;  %s1031_s13 = sphi %s1087_s13, %s1441_s13   ;;  %s1027_s12 = sphi %s1085_s12, %s1440_s12  }
   0x7   : > { %p40_p0 = scmp.ne.s32.totalorder %s1031_s13, %s1027_s12  ;;  %p41_p1 = scmp.eq.s32.totalorder %s1106_s16, 0 }
   0x8   : > { %p106_p2 = scmp.eq.s32.totalorder %s1106_s16, 1  ;;  %p112_p3 = scmp.eq.s32.totalorder %s748_s17, 1 }
   0x9   : > { %p1115_p4 = por %p41_p1, %p40_p0  ;;  %p749_p5 = scmp.ge.s32.totalorder %s1039_s15, 1 }
   0xa   : > { %p1120_p6 = por %p112_p3, %p40_p0  ;;  %p119_p7 = scmp.lt.s32.totalorder %s1039_s15, 3 }
   0xb   : > { %s131_s22 = sshll.u32 %s1425_s1, 4  ;;  %s1041_s24 = smov [#allocation5]   ;;  %s132_s22 = int_to_ptr.hbm [resolvable:$true] %s131_s22 }
   0xc   : > { %p1128_p8 = pnand %p749_p5, %p119_p7  ;;  %s133_s25 = sshll.u32 %s1041_s24, 4  ;;  %s134_s25 = int_to_ptr.vmem [resolvable:$true] %s133_s25 }
   0xd   : > { %s143_s28 = sshll.u32 %s1426_s2, 4  ;;  %s1042_s29 = smov [#allocation7]   ;;  %s144_s28 = int_to_ptr.hbm [resolvable:$true] %s143_s28 }
   0xe   : > { %p784_p10 = pneg %p1128_p8  ;;  %s145_s30 = sshll.u32 %s1042_s29, 4  ;;  %s146_s30 = int_to_ptr.vmem [resolvable:$true] %s145_s30 }
   0xf   : > { %s1141_s4 = sadd.s32 1, %s1039_s15   ;;  %s27_s5 = sadd.s32 1, %s1035_s14 }
  0x10   : > { %p785_p11 = pnand %p784_p10, %p41_p1  ;;  %s24_s6 = ssub.s32 %s1039_s15, %s1141_s4 }
  0x11   : > { %p34_p12 = scmp.ne.s32.totalorder %s1035_s14, %s1031_s13  ;;  %p25_p13 = scmp.eq.s32.totalorder %s24_s6, 0 }
  0x12   : > { %787 = dma.hbm_to_vmem [thread:$0]  (!%p785_p11), %s132_s22, 64, %s134_s25, [#allocation6]  }
  0x13   : > { %790 = dma.hbm_to_vmem [thread:$0]  (!%p785_p11), %s144_s28, 128, %s146_s30, [#allocation6]  }
  0x14   : > { %p35_p0 = scmp.eq.s32.totalorder %s1039_s15, 0  ;;  %p1151_p3 = por %p106_p2, %p34_p12 }
  0x15   : > { %p801_p5 = scmp.lt.s32.totalorder %s1039_s15, 2  ;;  %s156_s9 = sand.u32 1, %s1035_s14  }
  0x16   : > { %s1157_s8 = scalar_select %p25_p13, %s1035_s14, %s27_s5  }
  0x17   : > { %p36_p7 = por %p35_p0, %p34_p12  ;;  %s753_s10 = sshll.u32 %s156_s9, 3 }
  0x18   : > { %s770_s11 = sshll.u32 %s1039_s15, 3  ;;  %s160_s22 = scalar_lea.vmem [#allocation2], %s753_s10 }
  0x19   : > { %s165_s21 = scalar_lea.hbm %s1424_s0, %s770_s11  ;;  %s169_s24 = sshll.u32 %s160_s22, 4  ;;  %s170_s24 = int_to_ptr.vmem [resolvable:$true] %s169_s24 }
  0x1a   : > { %s167_s25 = sshll.u32 %s165_s21, 4  ;;  %p1164_p2 = pnand %p801_p5, %p36_p7  ;;  %s168_s25 = int_to_ptr.hbm [resolvable:$true] %s167_s25 }
  0x1b   : > { %s157_s27 = scalar_lea.sflag [#allocation3], %s156_s9  ;;  %s939_s28 = sshra.s32 %s168_s25, 4  ;;  %s940_s28 = int_to_ptr.hbm [resolvable:$true] %s939_s28 }
  0x1c   : > { %s941_s29 = scalar_lea.hbm %s940_s28, 8  ;;  %p943_p11 = pneg %p1164_p2 }
  0x1d   : > { %p942_p10 = scmp.ne.s32.totalorder %s940_s28, %s941_s29  ;;  %s946_s6 = scalar_lea.hbm %s1424_s0, 16 }
  0x1e   : > { %p947_p0 = scmp.lt.s32.totalorder %s940_s28, %s1424_s0  ;;  %p948_p5 = scmp.lt.s32.totalorder %s946_s6, %s941_s29 }
  0x1f   : > { %p944_p12 = pnand %p943_p11, %p942_p10 }
  0x20   : > { %p949_p7 = por %p948_p5, %p947_p0 }
  0x21   : > { %p945_p13 = pneg %p944_p12 }
  0x23   : > { %p950_p9 = pnand %p949_p7, %p945_p13 }
  0x25   : > { %953 = shalt.err (!%p950_p9)
}
  0x26   : > { %794 = dma.hbm_to_vmem [thread:$0]  (!%p1164_p2), %s168_s25, 128, %s170_s24, %s157_s27  }
  0x27   : > { %178 = sbr.rel (%p1128_p8) target bundleno = 737 (0x2e1), region = 32  ;;  %s1181_s9 = sand.u32 (!%p1128_p8), 1, %s1031_s13  }
  0x28   : > { %s757_s17 = sshll.u32 (!%p1128_p8), %s1181_s9, 3  ;;  %s181_s20 = scalar_lea.sflag (!%p1128_p8), [#allocation3], %s1181_s9 }
  0x29   : > { %s184_s21 = scalar_lea.vmem (!%p1128_p8), [#allocation2], %s757_s17 }
  0x2c   : > { %1014 = dma.done.wait (%p1115_p4), %s181_s20, 128  }
  0x2d   : > { %1016 = vsyncadd (%p1115_p4), %s181_s20, 4294967168 }
  0x2e   : > { %1018 = dma.done.wait (%p41_p1), [#allocation6], 192  }
  0x2f   : > { %1020 = vsyncadd (%p41_p1), [#allocation6], 4294967104  ;;  %v1043_v0 = vmov 0   ;;  %v1044_v1 = vmov 1   ;;  %v1193_v2 = vld [vmem:[#allocation5] sm:$0xf]  ;;  %v220_v36 = vlaneseq }
  0x30   : > { %861 = vset.pattern.permute.xlu1 %v1043_v0  ;;  %863 = vset.pattern.permute.xlu0 %v1044_v1  ;;  %v1195_v3 = vld [vmem:[%s184_s21] sm:$0xff]  ;;  %s1045_s18 = smov 17   ;;  %v1046_v6 = vmov 4   ;;  %s1047_s23 = smov 16   ;;  %v1048_v9 = vmov 2   ;;  %v1049_v12 = vmov 3  }
  0x31   : > { %287 = vperm.xlu1 %861, %v1193_v2   ;;  %268 = vst [vmem:[#allocation1] ss:$2 sm:$0xff] %v1195_v3  ;;  %s1050_s22 = smov 1   ;;  %s1051_s24 = smov 15   ;;  %v1052_v15 = vmov 5   ;;  %v1054_v18 = vmov 9  }
  0x32   : > { %s1053_s25 = smov 127   ;;  %870 = vset.pattern.permute.xlu2 %v1054_v18  ;;  %s1055_s26 = smov 113   ;;  %v1056_v21 = vmov 6   ;;  %v1058_v24 = vmov 7   ;;  %v1060_v26 = vmov 8   ;;  %v1061_v29 = vmov 16.0  }
  0x33   : > { %s1057_s27 = smov 112   ;;  %s1059_s28 = smov 111   ;;  %875 = vrcp.f32 %v1061_v29  ;;  %v1223_v39 = vand.u32 127, %v220_v36  ;;  %vm295_vm15 = vcmask 1043456  }
  0x34   : > { %s760_s29 = sshll.u32 %s1181_s9, 4  ;;  %s771_s30 = sshll.u32 %s1106_s16, 4 }
  0x35   : > { %v1228_v43 = vadd.s32 128, %v1223_v39  ;;  %v223_v49 = vcvt.s32.f32 %v1223_v39  ;;  %vm277_vm1 = vcmp.lt.s32.totalorder %v1223_v39, 17  ;;  %vm338_vm3 = vcmp.lt.s32.totalorder %v1223_v39, 15  ;;  %s654_s10 = scalar_lea.hbm %s1427_s3, %s771_s30  ;;  %s217_s11 = scalar_lea.vmem [#allocation8], %s760_s29 }
  0x36   : > { %vm308_vm5 = vcmp.lt.s32.totalorder %v1223_v39, 16  ;;  %vm240_vm7 = vcmp.ge.s32.totalorder %v1223_v39, 16  ;;  %vm368_vm9 = vcmp.lt.s32.totalorder %v1223_v39, 1  ;;  %vm398_vm11 = vcmp.lt.s32.totalorder %v1223_v39, 127  ;;  %s656_s17 = sshll.u32 %s217_s11, 4  ;;  %s658_s20 = sshll.u32 %s654_s10, 4  ;;  %s657_s17 = int_to_ptr.vmem [resolvable:$true] %s656_s17  ;;  %s659_s20 = int_to_ptr.hbm [resolvable:$true] %s658_s20 }
  0x37   : > { %v224_v46 = vcvt.s32.f32 %v1228_v43  ;;  %vm428_vm12 = vcmp.lt.s32.totalorder %v1223_v39, 113  ;;  %vm243_vm13 = vcmp.lt.s32.totalorder %v1228_v43, 240  ;;  %s643_s21 = scalar_lea.sflag [#allocation4], %s1181_s9 }
  0x38   : > { %v269_v4 = vld.sshfl [vmem:[#allocation1] sm:$0xff pattern:$0x75316420]  ;;  %v270_v5 = vld.sshfl [vmem:[#allocation1 + $0x8] sm:$0xff pattern:$0x75316420] }
  0x39   : > { %273 = vrot.lane.b32.xlu0 %v269_v4, %s1045_s18  ;;  %862 = vset.pattern.permute.xlu1 %v1046_v6  ;;  %299 = vst [vmem:[#allocation1] ss:$2 sm:$0xff] %v1195_v3  ;;  %v876_v32 = vpop.eup %875  ;;  %v1062_v4 = vmov 839922192  }
  0x3a   : > { %259 = vperm.xlu1 %862, %v1193_v2   ;;  %v226_v34 = vmul.f32 16.0, %v876_v32  ;;  %vm230_vm0 = vweird.f32 %v876_v32 }
  0x3c   : > { %v227_v38 = vsub.f32 1.0, %v226_v34 }
  0x3e   : > { %v228_v40 = vmul.f32 %v876_v32, %v227_v38 }
  0x40   : > { %v300_v7 = vld.sshfl [vmem:[#allocation1] sm:$0xff pattern:$0x75316420]  ;;  %v301_v8 = vld.sshfl [vmem:[#allocation1 + $0x8] sm:$0xff pattern:$0x75316420]  ;;  %v229_v44 = vadd.f32 %v876_v32, %v228_v40 }
  0x41   : > { %275 = vrot.lane.b32.xlu0 %v270_v5, %s1045_s18  ;;  %304 = vrot.lane.b32.xlu2 %v300_v7, %s1047_s23  ;;  %329 = vst [vmem:[#allocation1] ss:$2 sm:$0xff] %v1195_v3  ;;  %v262_v5 = vunpack.c.l.s4 %v1062_v4  ;;  %s983_s18 = sshra.s32 %s659_s20, 4  ;;  %s984_s18 = int_to_ptr.hbm [resolvable:$true] %s983_s18 }
  0x42   : > { %864 = vset.pattern.permute.xlu1 %v1048_v9  ;;  %v231_v47 = vsel %vm230_vm0, %v876_v32, %v229_v44  ;;  %vm458_vm0 = vcmp.lt.s32.totalorder %v1223_v39, 112  ;;  %s985_s16 = scalar_lea.hbm %s984_s18, 16  ;;  %p990_p9 = scmp.lt.s32.totalorder %s984_s18, %s1427_s3 }
  0x43   : > { %348 = vperm.xlu1 %864, %v1193_v2   ;;  %v233_v50 = vmul.f32 %v231_v47, %v224_v46  ;;  %v232_v52 = vmul.f32 %v231_v47, %v223_v49  ;;  %p986_p1 = scmp.ne.s32.totalorder %s984_s18, %s985_s16 }
  0x45   : > { %v235_v53 = vfloor.f32 %v233_v50  ;;  %v234_v56 = vfloor.f32 %v232_v52  ;;  %p987_p4 = pnand %p986_p1, %p1151_p3 }
  0x47   : > { %v237_v57 = vmul.f32 16.0, %v235_v53  ;;  %v236_v59 = vmul.f32 16.0, %v234_v56  ;;  %p988_p8 = pneg %p987_p4 }
  0x48   : > { %v330_v10 = vld.sshfl [vmem:[#allocation1] sm:$0xff pattern:$0x75316420]  ;;  %v331_v11 = vld.sshfl [vmem:[#allocation1 + $0x8] sm:$0xff pattern:$0x75316420] }
  0x49   : > { %318 = vperm.xlu0 %863, %v1193_v2   ;;  %359 = vst [vmem:[#allocation1] ss:$2 sm:$0xff] %v1195_v3  ;;  %306 = vrot.lane.b32.xlu2 %v301_v8, %s1047_s23  ;;  %v1242_v60 = vsub.f32 %v224_v46, %v237_v57  ;;  %v1247_v63 = vsub.f32 %v223_v49, %v236_v59 }
  0x4b   : > { %865 = vset.pattern.permute.xlu1 %v1049_v12  ;;  %vm245_vm2 = vcmp.ge.f32.partialorder %v1242_v60, 1.0  ;;  %vm244_vm4 = vcmp.ge.f32.partialorder %v1247_v63, 1.0  ;;  %vm247_vm6 = vcmp.le.f32.partialorder %v1242_v60, 14.0  ;;  %vm246_vm10 = vcmp.le.f32.partialorder %v1247_v63, 14.0 }
  0x4c   : > { %378 = vperm.xlu1 %865, %v1193_v2   ;;  %vm1269_vm8 = vmand %vm240_vm7, %vm244_vm4 }
  0x4d   : > { %vm1294_vm14 = vmand %vm240_vm7, %vm246_vm10 }
  0x50   : > { %v361_v13 = vld.sshfl [vmem:[#allocation1 + $0x8] sm:$0xff pattern:$0x75316420]  ;;  %v360_v14 = vld.sshfl [vmem:[#allocation1] sm:$0xff pattern:$0x75316420] }
  0x51   : > { %366 = vrot.lane.b32.xlu0 %v361_v13, %s1050_s22  ;;  %389 = vst [vmem:[#allocation1] ss:$2 sm:$0xff] %v1195_v3  ;;  %336 = vrot.lane.b32.xlu2 %v331_v11, %s1051_s24 }
  0x52   : > { %874 = vset.pattern.permute.xlu0 %v1046_v6 }
  0x54   : > { %334 = vrot.lane.b32.xlu1 %v330_v10, %s1051_s24  ;;  %v1263_v10 = vunpack.c.0.s8 %v262_v5  ;;  %s989_s24 = scalar_lea.hbm %s1427_s3, 32 }
  0x55   : > { %866 = vset.pattern.permute.xlu1 %v1052_v15  ;;  %p991_p2 = scmp.lt.s32.totalorder %s989_s24, %s985_s16 }
  0x57   : > { %p992_p10 = por %p991_p2, %p990_p9 }
  0x58   : > { %v390_v16 = vld.sshfl [vmem:[#allocation1] sm:$0xff pattern:$0x75316420]  ;;  %v391_v17 = vld.sshfl [vmem:[#allocation1 + $0x8] sm:$0xff pattern:$0x75316420] }
  0x59   : > { %396 = vrot.lane.b32.xlu0 %v391_v17, %s1053_s25  ;;  %419 = vst [vmem:[#allocation1] ss:$2 sm:$0xff] %v1195_v3  ;;  %364 = vrot.lane.b32.xlu2 %v360_v14, %s1050_s22  ;;  %p993_p11 = pnand %p992_p10, %p988_p8 }
  0x5c   : > { %408 = vperm.xlu1 %866, %v1193_v2  }
  0x60   : > { %v420_v19 = vld.sshfl [vmem:[#allocation1] sm:$0xff pattern:$0x75316420]  ;;  %v421_v20 = vld.sshfl [vmem:[#allocation1 + $0x8] sm:$0xff pattern:$0x75316420] }
  0x61   : > { %449 = vst [vmem:[#allocation1] ss:$2 sm:$0xff] %v1195_v3  ;;  %426 = vrot.lane.b32.xlu0 %v421_v20, %s1055_s26  ;;  %394 = vrot.lane.b32.xlu2 %v390_v16, %s1053_s25 }
  0x64   : > { %867 = vset.pattern.permute.xlu1 %v1056_v21 }
  0x65   : > { %438 = vperm.xlu1 %867, %v1193_v2  }
  0x68   : > { %v450_v22 = vld.sshfl [vmem:[#allocation1] sm:$0xff pattern:$0x75316420]  ;;  %v451_v23 = vld.sshfl [vmem:[#allocation1 + $0x8] sm:$0xff pattern:$0x75316420] }
  0x69   : > { %456 = vrot.lane.b32.xlu0 %v451_v23, %s1057_s27  ;;  %479 = vst [vmem:[#allocation1] ss:$2 sm:$0xff] %v1195_v3  ;;  %424 = vrot.lane.b32.xlu2 %v420_v19, %s1055_s26 }
  0x6d   : > { %868 = vset.pattern.permute.xlu1 %v1058_v24 }
  0x6e   : > { %468 = vperm.xlu1 %868, %v1193_v2  }
  0x70   : > { %v481_v25 = vld.sshfl [vmem:[#allocation1 + $0x8] sm:$0xff pattern:$0x75316420]  ;;  %v480_v27 = vld.sshfl [vmem:[#allocation1] sm:$0xff pattern:$0x75316420] }
  0x71   : > { %486 = vrot.lane.b32.xlu0 %v481_v25, %s1059_s28  ;;  %454 = vrot.lane.b32.xlu2 %v450_v22, %s1057_s27 }
  0x76   : > { %869 = vset.pattern.permute.xlu1 %v1060_v26 }
  0x77   : > { %498 = vperm.xlu1 %869, %v1193_v2  }
  0x79   : > { %484 = vrot.lane.b32.xlu2 %v480_v27, %s1059_s28 }
  0x81   : > { %510 = vperm.xlu2 %870, %v1193_v2  }
  0x9b   : > { %v305_v28 = vpop.permute.xlu2 %304 }
  0xa3   : > { %v1219_v30 = vpop.permute.xlu1 %287  ;;  %v307_v31 = vpop.permute.xlu2 %306 }
  0xa4   : > { %v309_v14 = vsel %vm308_vm5, %v305_v28, %v307_v31  ;;  %v310_v16 = vsel %vm308_vm5, %v307_v31, %v305_v28 }
  0xa5   : > { %v315_v34 = vsel %vm240_vm7, %v310_v16, 0.0  ;;  %vm593_vm7 = vcmask 31744  }
  0xab   : > { %v274_v33 = vpop.permute.xlu0 %273  ;;  %v337_v37 = vpop.permute.xlu2 %336 }
  0xac   : > { %v1221_v35 = vpop.permute.xlu1 %259 }
  0xad   : > { %v264_v27 = vperm.slane %v1221_v35, %v1263_v10 }
  0xaf   : > { %v266_v44 = vmul.f32 %v264_v27, %v1195_v3 }
  0xb3   : > { %v276_v41 = vpop.permute.xlu0 %275  ;;  %v1230_v45 = vpop.permute.xlu2 %364 }
  0xb4   : > { %v278_v0 = vsel %vm277_vm1, %v274_v33, %v276_v41  ;;  %v279_v12 = vsel %vm277_vm1, %v276_v41, %v274_v33  ;;  %vm1317_vm1 = vmand %vm243_vm13, %vm245_vm2 }
  0xb5   : > { %v1225_v42 = vpop.permute.xlu1 %348  ;;  %v285_v7 = vsel %vm245_vm2, %v278_v0, 0.0  ;;  %v284_v19 = vsel %vm1269_vm8, %v279_v12, 0.0 }
  0xb6   : > { %v291_v13 = vmul.f32 %v1219_v30, %v285_v7  ;;  %v290_v28 = vmul.f32 %v1219_v30, %v284_v19 }
  0xb8   : > { %v294_v22 = vrot.slane %v291_v13, 4 }
  0xbb   : > { %v1233_v48 = vpop.permute.xlu0 %318  ;;  %v1238_v54 = vpop.permute.xlu2 %394 }
  0xbc   : > { %v322_v17 = vmul.f32 %v1233_v48, %v309_v14  ;;  %v321_v38 = vmul.f32 %v1233_v48, %v315_v34 }
  0xbe   : > { %v1236_v51 = vpop.permute.xlu1 %378  ;;  %v325_v29 = vrot.slane %v322_v17, 4 }
  0xc0   : > { %v326_v50 = vsel %vm295_vm15, %v321_v38, %v325_v29 }
  0xc3   : > { %v1240_v55 = vpop.permute.xlu0 %366  ;;  %v1245_v62 = vpop.permute.xlu2 %424 }
  0xc4   : > { %v369_v20 = vsel %vm368_vm9, %v1230_v45, %v1240_v55  ;;  %v370_v46 = vsel %vm368_vm9, %v1240_v55, %v1230_v45 }
  0xc5   : > { %v376_v31 = vsel %vm245_vm2, %v369_v20, 0.0  ;;  %v375_v45 = vsel %vm244_vm4, %v370_v46, 0.0  ;;  %vm488_vm2 = vcmp.lt.s32.totalorder %v1223_v39, 111 }
  0xc6   : > { %v335_v58 = vpop.permute.xlu1 %334  ;;  %v382_v47 = vmul.f32 %v1236_v51, %v376_v31  ;;  %v381_v7 = vmul.f32 %v1236_v51, %v375_v45 }
  0xc7   : > { %v339_v8 = vsel %vm338_vm3, %v335_v58, %v337_v37  ;;  %v340_v24 = vsel %vm338_vm3, %v337_v37, %v335_v58  ;;  %v296_v37 = vsel %vm295_vm15, %v290_v28, %v294_v22  ;;  %vm255_vm3 = vmand %vm243_vm13, %vm247_vm6 }
  0xc8   : > { %v346_v15 = vsel %vm247_vm6, %v339_v8, 0.0  ;;  %v345_v30 = vsel %vm1294_vm14, %v340_v24, 0.0  ;;  %v298_v53 = vadd.f32 %v296_v37, %v266_v44 }
  0xc9   : > { %v352_v25 = vmul.f32 %v1225_v42, %v346_v15  ;;  %v351_v48 = vmul.f32 %v1225_v42, %v345_v30 }
  0xca   : > { %v328_v0 = vadd.f32 %v326_v50, %v298_v53 }
  0xcb   : > { %v397_v61 = vpop.permute.xlu0 %396  ;;  %v455_v18 = vpop.permute.xlu2 %454  ;;  %v355_v40 = vrot.slane %v352_v25, 4 }
  0xcc   : > { %v400_v26 = vsel %vm398_vm11, %v397_v61, %v1238_v54  ;;  %v399_v52 = vsel %vm398_vm11, %v1238_v54, %v397_v61  ;;  %v385_v54 = vrot.slane %v382_v47, 4 }
  0xcd   : > { %v406_v35 = vsel %vm247_vm6, %v400_v26, 0.0  ;;  %v356_v55 = vsel %vm295_vm15, %v351_v48, %v355_v40  ;;  %v405_v61 = vsel %vm246_vm10, %v399_v52, 0.0  ;;  %v1063_v48 = vmov 10  }
  0xce   : > { %v1252_v1 = vpop.permute.xlu1 %408  ;;  %v358_v8 = vadd.f32 %v356_v55, %v328_v0  ;;  %v386_v14 = vsel %vm295_vm15, %v381_v7, %v385_v54  ;;  %871 = vset.pattern.permute.xlu2 %v1063_v48 }
  0xcf   : > { %v412_v3 = vmul.f32 %v1252_v1, %v406_v35 }
  0xd0   : > { %v388_v19 = vadd.f32 %v386_v14, %v358_v8 }
  0xd1   : > { %v415_v4 = vrot.slane %v412_v3, 4 }
  0xd3   : > { %v427_v9 = vpop.permute.xlu0 %426  ;;  %v485_v59 = vpop.permute.xlu2 %484 }
  0xd4   : > { %v430_v32 = vsel %vm428_vm12, %v427_v9, %v1245_v62  ;;  %v429_v57 = vsel %vm428_vm12, %v1245_v62, %v427_v9  ;;  %v411_v62 = vmul.f32 %v1252_v1, %v405_v61 }
  0xd5   : > { %v436_v49 = vsel %vm1317_vm1, %v430_v32, 0.0  ;;  %v435_v11 = vsel %vm244_vm4, %v429_v57, 0.0 }
  0xd6   : > { %v416_v15 = vsel %vm295_vm15, %v411_v62, %v415_v4 }
  0xd7   : > { %v439_v21 = vpop.permute.xlu1 %438  ;;  %v418_v23 = vadd.f32 %v416_v15, %v388_v19 }
  0xd8   : > { %v442_v42 = vmul.f32 %v439_v21, %v436_v49  ;;  %v441_v16 = vmul.f32 %v439_v21, %v435_v11  ;;  %v219_v11 = vld [vmem:[#allocation7] sm:$0xff] }
  0xda   : > { %v445_v9 = vrot.slane %v442_v42, 4 }
  0xdb   : > { %v457_v36 = vpop.permute.xlu0 %456  ;;  %v511_v26 = vpop.permute.xlu2 %510 }
  0xdc   : > { %v460_v41 = vsel %vm458_vm0, %v457_v36, %v455_v18  ;;  %v459_v51 = vsel %vm458_vm0, %v455_v18, %v457_v36  ;;  %v446_v22 = vsel %vm295_vm15, %v441_v16, %v445_v9  ;;  %v515_v39 = vperm.slane %v511_v26, %v1263_v10 }
  0xdd   : > { %v466_v56 = vsel %vm243_vm13, %v460_v41, 0.0  ;;  %v448_v27 = vadd.f32 %v446_v22, %v418_v23 }
  0xe0   : > { %v469_v58 = vpop.permute.xlu1 %468 }
  0xe1   : > { %v472_v5 = vmul.f32 %v469_v58, %v466_v56  ;;  %v471_v60 = vmul.f32 %v469_v58, %v459_v51 }
  0xe3   : > { %v487_v12 = vpop.permute.xlu0 %486  ;;  %v475_v17 = vrot.slane %v472_v5, 4  ;;  %v1064_v5 = vmov 11  }
  0xe4   : > { %v490_v13 = vsel %vm488_vm2, %v487_v12, %v485_v59  ;;  %v489_v1 = vsel %vm488_vm2, %v485_v59, %v487_v12 }
  0xe5   : > { %v496_v20 = vsel %vm255_vm3, %v490_v13, 0.0  ;;  %v495_v43 = vsel %vm246_vm10, %v489_v1, 0.0  ;;  %v476_v25 = vsel %vm295_vm15, %v471_v60, %v475_v17 }
  0xe6   : > { %v478_v29 = vadd.f32 %v476_v25, %v448_v27 }
  0xe9   : > { %v499_v24 = vpop.permute.xlu1 %498 }
  0xea   : > { %v502_v18 = vmul.f32 %v499_v24, %v496_v20  ;;  %v501_v21 = vmul.f32 %v499_v24, %v495_v43 }
  0xec   : > { %v505_v28 = vrot.slane %v502_v18, 4 }
  0xee   : > { %v506_v31 = vsel %vm295_vm15, %v501_v21, %v505_v28 }
  0xef   : > { %v508_v32 = vadd.f32 %v506_v31, %v478_v29 }
  0xf1   : > { %v517_v33 = vadd.f32 %v515_v39, %v508_v32 }
  0xf3   : > { %519 = vst [vmem:[#allocation1] ss:$2 sm:$0xff] %v517_v33  ;;  %v529_v34 = vmul.f32 %v517_v33, %v517_v33 }
  0xfa   : > { %v520_v30 = vld.sshfl [vmem:[#allocation1] sm:$0xff pattern:$0x75316420]  ;;  %v521_v63 = vld.sshfl [vmem:[#allocation1 + $0x8] sm:$0xff pattern:$0x75316420] }
  0xfb   : > { %v524_v35 = vsel %vm295_vm15, %v520_v30, 0.0  ;;  %v525_v36 = vsel %vm295_vm15, %v521_v63, 0.0  ;;  %531 = vst [vmem:[#allocation1] ss:$2 sm:$0xff] %v529_v34 }
  0xfc   : > { %v526_v37 = vadd.f32 %v525_v36, %v524_v35 }
  0xfe   : > { %527 = vadd.xlane.f32.xlu0 %v526_v37 }
 0x102   : > { %v532_v38 = vld.sshfl [vmem:[#allocation1] sm:$0xff pattern:$0x75316420]  ;;  %v533_v40 = vld.sshfl [vmem:[#allocation1 + $0x8] sm:$0xff pattern:$0x75316420] }
 0x103   : > { %v536_v41 = vsel %vm295_vm15, %v532_v38, 0.0  ;;  %v537_v44 = vsel %vm295_vm15, %v533_v40, 0.0 }
 0x104   : > { %v538_v46 = vadd.f32 %v537_v44, %v536_v41 }
 0x106   : > { %539 = vadd.xlane.f32.xlu1 %v538_v46 }
 0x171   : > { %v528_v47 = vpop.xlane.xlu0 %527 }
 0x172   : > { %v541_v49 = vmul.f32 0.00390625, %v528_v47 }
 0x174   : > { %v543_v52 = vmul.f32 %v541_v49, %v541_v49 }
 0x179   : > { %v540_v50 = vpop.xlane.xlu1 %539 }
 0x17a   : > { %v542_v3 = vmul.f32 0.00390625, %v540_v50 }
 0x17c   : > { %v544_v53 = vsub.f32 %v542_v3, %v543_v52 }
 0x17e   : > { %v545_v56 = vmax.f32 %v544_v53, 0.0 }
 0x180   : > { %v546_v45 = vadd.f32 1e-05, %v545_v56 }
 0x182   : > { %877 = vrsqrt.f32 %v546_v45  ;;  %vm553_vm5 = vweird.f32 %v546_v45 }
 0x188   : > { %v878_v55 = vpop.eup %877 }
 0x189   : > { %v548_v57 = vmul.f32 %v878_v55, %v546_v45  ;;  %vm554_vm4 = vweird.f32 %v878_v55 }
 0x18a   : > { %vm555_vm6 = vmor %vm553_vm5, %vm554_vm4 }
 0x18b   : > { %v549_v42 = vmul.f32 %v878_v55, %v548_v57 }
 0x18d   : > { %v550_v58 = vmul.f32 0.5, %v549_v42 }
 0x18f   : > { %v551_v59 = vsub.f32 1.5, %v550_v58 }
 0x191   : > { %v552_v0 = vmul.f32 %v878_v55, %v551_v59 }
 0x193   : > { %v556_v54 = vsel %vm555_vm6, %v878_v55, %v552_v0 }
 0x194   : > { %v557_v61 = vmul.f32 %v556_v54, %v1193_v2 }
 0x196   : > { %v558_v4 = vmul.f32 %v557_v61, %v541_v49 }
 0x198   : > { %560 = vrot.lane.b32.xlu2 %v558_v4, %s1050_s22 }
 0x1a0   : > { %566 = vperm.xlu2 %871, %v557_v61  }
 0x1a8   : > { %872 = vset.pattern.permute.xlu2 %v1064_v5 }
 0x1f2   : > { %v561_v7 = vpop.permute.xlu2 %560 }
 0x1f3   : > { %v563_v8 = vsub.f32 %v1193_v2, %v561_v7 }
 0x1f5   : > { %576 = vperm.xlu2 %872, %v563_v8  }
 0x1fa   : > { %v567_v12 = vpop.permute.xlu2 %566 }
 0x1fb   : > { %v571_v62 = vperm.slane %v567_v12, %v1263_v10 }
 0x1fd   : > { %873 = vset.pattern.permute.xlu2 %v1046_v6  ;;  %v573_v13 = vmul.f32 %v571_v62, %v517_v33 }
 0x1fe   : > { %586 = vperm.xlu2 %873, %v219_v11  }
 0x24f   : > { %v577_v9 = vpop.permute.xlu2 %576 }
 0x250   : > { %v581_v14 = vperm.slane %v577_v9, %v1263_v10 }
 0x252   : > { %v583_v51 = vadd.f32 %v581_v14, %v573_v13 }
 0x254   : > { %590 = vst [vmem:[#allocation1] ss:$2 sm:$0xff] %v583_v51 }
 0x258   : > { %v587_v2 = vpop.permute.xlu2 %586 }
 0x25b   : > { %v591_v15 = vld.sshfl [vmem:[#allocation1] sm:$0xff pattern:$0x75316420]  ;;  %v592_v16 = vld.sshfl [vmem:[#allocation1 + $0x8] sm:$0xff pattern:$0x75316420] }
 0x25c   : > { %761 = vmatpush.msk.msra.mxu0 %vm295_vm15, %v591_v15  ;;  %763 = vmatpush.msk.msra.mxu1 %vm295_vm15, %v592_v16 }
 0x25d   : > { %762 = vmatmul.msk.f32.vlgmr.msra.gmra.mxu0 %vm593_vm7, %v219_v11  ;;  %764 = vmatmul.msk.f32.vlgmr.msra.gmra.mxu1 %vm593_vm7, %v219_v11 }
 0x2da   : > { %v617_v6 = vpop.f32.mrf.mxu0  ;;  %v637_v10 = vpop.f32.mrf.mxu1 }
 0x2db   : > { %v618_v17 = vadd.f32 %v617_v6, %v587_v2  ;;  %v638_v1 = vadd.f32 %v637_v10, %v587_v2 }
 0x2dd   : > { %640 = vst [vmem:[%s217_s11] sm:$0xff] %v618_v17 }
 0x2de   : > { %641 = vst [vmem:[%s217_s11 + $0x8] sm:$0xff] %v638_v1 }
 0x2df   : > { %996 = shalt.err (!%p993_p11)
}
 0x2e0   : > { %782 = dma.vmem_to_hbm [thread:$0]  (%p1151_p3), %s657_s17, 256, %s659_s20, %s643_s21  }
 0x2e1 PF: > { %s670_s9 = sand.u32 1, %s1027_s12   ;;  %p1439_p12 = scmp.ge.s32.totalorder %s1039_s15, 2 }
 0x2e2   : > { %s671_s27 = scalar_lea.sflag [#allocation4], %s670_s9 }
 0x2e3   : > { %p796_p13 = pnand %p1439_p12, %p1120_p6 }
 0x2e5   : > { %p797_p0 = pneg %p796_p13 }
 0x2e7   : > { %1022 = dma.done.wait (%p797_p0), %s671_s27, 256  }
 0x2e8   : > { %1024 = vsyncadd (%p797_p0), %s671_s27, 4294967040  ;;  %p17_p5 = scmp.ge.s32.totalorder %s1141_s4, 4   ;;  %s1440_s12 = smov %s1031_s13 }
 0x2e9   : > { %s1441_s13 = smov %s1035_s14  ;;  %s1442_s14 = smov %s1157_s8 }
 0x2ea   : > { %s1443_s15 = smov %s1141_s4  ;;  %19 = sbr.rel (!%p17_p5) target bundleno = 6 (0x6), region = 85 }
 0x2ef   :  { %677 = vsyncpa [#allocation3], 1 }
 0x2f0   :  { %679 = vsyncpa [#allocation3 + $0x1], 1 }
 0x2f1   :  { %680 = vsyncpa [#allocation6], 1 }
 0x2f2   :  { %681 = vsyncpa [#allocation4], 1 }
 0x2f3   :  { %683 = vsyncpa [#allocation4 + $0x1], 1 }

</bundles_post_ra>
